<compile_context>
chip_gen: v5e
topology: v5e:2x2
jax: 0.10.0
libtpu: 0.0.40
codegen_flags: <defaults>
</compile_context>

<pallas_src>
import numpy as np
import jax
import jax.numpy as jnp
from jax.experimental import pallas as pl
from jax.experimental.pallas import tpu as pltpu


# ----------------------------------------------------------------------------
# Pallas kernel: one batch block per grid step, everything 2D and lane-dense.
# ----------------------------------------------------------------------------
def _operator_block_kernel(x_ref, k_ref, bias_ref, red_ref, exp_ref,
                           gamma_ref, beta_ref, o_ref):
    # x_ref    : (block_b, Cin*Lin)
    # k_ref    : (Cin*Lin, Cout*dim1)   folded spectral + pointwise operator
    # bias_ref : (1, Cout*dim1)         conv bias broadcast along dim1
    # red_ref  : (Cout*dim1, Cout)      per-channel mean reduction (entries 1/dim1)
    # exp_ref  : (Cout, Cout*dim1)      per-channel broadcast (entries 0/1)
    # gamma_ref, beta_ref : (1, Cout*dim1)  InstanceNorm affine, pre-broadcast
    # o_ref    : (block_b, Cout*dim1)

    # Entire pre-norm computation (spectral conv + 1x1 conv + interpolation)
    # as a single deep MXU matmul, f32 accumulation.
    z = jnp.dot(x_ref[...], k_ref[...],
                preferred_element_type=jnp.float32) + bias_ref[...]

    # InstanceNorm1d (biased variance, eps=1e-5); reductions/broadcasts stay
    # on the MXU via the reduce/expand matrices -> no reshapes/transposes.
    mean = jnp.dot(z, red_ref[...], preferred_element_type=jnp.float32)       # (bb, Cout)
    zc = z - jnp.dot(mean, exp_ref[...], preferred_element_type=jnp.float32)  # (bb, Cout*dim1)
    var = jnp.dot(zc * zc, red_ref[...], preferred_element_type=jnp.float32)  # (bb, Cout)
    inv = jax.lax.rsqrt(var + 1e-5)
    zn = zc * jnp.dot(inv, exp_ref[...], preferred_element_type=jnp.float32)
    zn = zn * gamma_ref[...] + beta_ref[...]

    # Exact (erf-based) GELU, matching torch F.gelu default.
    out = 0.5 * zn * (1.0 + jax.lax.erf(zn * 0.7071067811865476))
    o_ref[...] = out.astype(o_ref.dtype)


# ----------------------------------------------------------------------------
# Host-side operator construction (plain numpy, built once).
# ----------------------------------------------------------------------------
def _interp_matrix_np(n_in, n_out):
    """F.interpolate(mode='linear', align_corners=True, antialias=True) as an
    (n_out, n_in) matrix. Antialias only matters when downsampling."""
    P = np.zeros((n_out, n_in), dtype=np.float64)
    if n_out == 1:
        P[0, 0] = 1.0
        return P
    scale = (n_in - 1) / (n_out - 1)
    if scale <= 1.0:
        # Upsampling / same-size: antialias is a no-op -> plain linear interp.
        for i in range(n_out):
            src = scale * i
            j0 = min(int(np.floor(src)), n_in - 1)
            j1 = min(j0 + 1, n_in - 1)
            w = src - j0
            P[i, j0] += 1.0 - w
            P[i, j1] += w
    else:
        # Downsampling: normalized triangle filter with support = scale.
        # TODO(synk): tap-boundary rounding may differ from PyTorch's AA kernel by one tap.
        for i in range(n_out):
            center = scale * i
            jmin = max(int(np.ceil(center - scale)), 0)
            jmax = min(int(np.floor(center + scale)), n_in - 1)
            idx = np.arange(jmin, jmax + 1)
            w = np.maximum(0.0, 1.0 - np.abs(idx - center) / scale)
            s = w.sum()
            if s > 0:
                w = w / s
            P[i, idx] = w
    return P


def _build_fused_operator(params, Lin, dim1):
    """Fold rfft -> complex mode mixing -> irfft  PLUS  1x1 conv -> interp
    into a single real operator K (Cin*Lin, Cout*dim1) and bias (1, Cout*dim1)."""
    spec_wr = np.asarray(params["spec_wr"], np.float64)
    spec_wi = np.asarray(params["spec_wi"], np.float64)
    conv_w = np.asarray(params["conv_w"], np.float64)
    conv_b = np.asarray(params["conv_b"], np.float64)
    Cin, Cout, M = spec_wr.shape
    assert M <= Lin // 2 + 1 and M <= dim1 // 2 + 1, "modes1 incompatible with grid sizes"

    # rfft(x, norm='forward') truncated to M modes: includes the 1/Lin factor.
    l = np.arange(Lin)[:, None]
    m = np.arange(M)[None, :]
    F = np.exp(-2j * np.pi * l * m / Lin) / Lin                       # (Lin, M)

    # irfft(., n=dim1, norm='forward') synthesis of the first M bins (no 1/n).
    mm = np.arange(M)[:, None]
    t = np.arange(dim1)[None, :]
    c = np.full((M, 1), 2.0)
    c[0, 0] = 1.0
    if dim1 % 2 == 0 and M - 1 == dim1 // 2:
        c[-1, 0] = 1.0                                                # Nyquist counted once
    E = c * np.exp(2j * np.pi * mm * t / dim1)                        # (M, dim1)

    W = spec_wr + 1j * spec_wi                                        # (Cin, Cout, M)
    # K_spec[i,l,o,t] = Re( sum_m F[l,m] W[i,o,m] E[m,t] )  (x is real).
    k_spec = np.einsum('lm,iom,mt->ilot', F, W, E).real               # (Cin, Lin, Cout, dim1)

    # Pointwise path: 1x1 conv then linear interpolation matrix P (dim1, Lin).
    P = _interp_matrix_np(Lin, dim1)
    k_pw = np.einsum('oi,tl->ilot', conv_w, P)                        # (Cin, Lin, Cout, dim1)

    K = (k_spec + k_pw).reshape(Cin * Lin, Cout * dim1)
    # Rows of P sum to 1, so the conv bias passes through interpolation unchanged.
    bias = np.broadcast_to(conv_b[:, None], (Cout, dim1)).reshape(1, Cout * dim1)
    return jnp.asarray(K, jnp.float32), jnp.asarray(bias, jnp.float32)


def _norm_matrices(Cout, dim1, gamma, beta):
    """Reduce/expand matrices for per-channel InstanceNorm on a flat
    (Cout*dim1) lane axis, plus pre-broadcast affine parameters."""
    red = np.zeros((Cout * dim1, Cout), np.float32)
    expm = np.zeros((Cout, Cout * dim1), np.float32)
    for c in range(Cout):
        red[c * dim1:(c + 1) * dim1, c] = 1.0 / dim1
        expm[c, c * dim1:(c + 1) * dim1] = 1.0
    gfull = np.repeat(np.asarray(gamma, np.float32), dim1).reshape(1, Cout * dim1)
    bfull = np.repeat(np.asarray(beta, np.float32), dim1).reshape(1, Cout * dim1)
    return (jnp.asarray(red), jnp.asarray(expm),
            jnp.asarray(gfull), jnp.asarray(bfull))


# ----------------------------------------------------------------------------
# Wrapper.
# ----------------------------------------------------------------------------
def _pick_block_b(B, target_rows=256):
    """Largest divisor of B that is a multiple of 8 (or B itself) so 2D block
    shapes satisfy the (8,128) tiling rule; prefer leaving >= 2 grid steps so
    the 'parallel' axis splits across v7x's two TensorCores."""
    cands = [d for d in range(1, B + 1)
             if B % d == 0 and (d == B or d % 8 == 0) and d <= target_rows]
    if not cands:
        return B
    multi = [d for d in cands if B // d >= 2]
    return max(multi) if multi else max(cands)


def operator_block_1d(x, params, dim1, block_b=None, compute_dtype=jnp.float32):
    B, Cin, Lin = x.shape
    Cout = params["conv_w"].shape[0]

    K, bias = _build_fused_operator(params, Lin, dim1)
    red, expm, gfull, bfull = _norm_matrices(Cout, dim1, params["gamma"], params["beta"])

    if block_b is None:
        block_b = _pick_block_b(B)
    assert B % block_b == 0, "block_b must divide the batch size"
    nb = B // block_b

    cin_lin = Cin * Lin
    cout_d = Cout * dim1

    # Lane-dense 2D views: input as (B, Cin*Lin), output as (B, Cout*dim1).
    x2d = x.reshape(B, cin_lin).astype(compute_dtype)
    K = K.astype(compute_dtype)

    def const_spec(a):
        return pl.BlockSpec(a.shape, lambda i: (0, 0))

    out2d = pl.pallas_call(
        _operator_block_kernel,
        out_shape=jax.ShapeDtypeStruct((B, cout_d), jnp.float32),
        grid=(nb,),
        in_specs=[pl.BlockSpec((block_b, cin_lin), lambda i: (i, 0)),
                  const_spec(K), const_spec(bias), const_spec(red),
                  const_spec(expm), const_spec(gfull), const_spec(bfull)],
        out_specs=pl.BlockSpec((block_b, cout_d), lambda i: (i, 0)),
        compiler_params=pltpu.CompilerParams(
            dimension_semantics=("parallel",)),
    )(x2d, K, bias, red, expm, gfull, bfull)

    return out2d.reshape(B, Cout, dim1)


# ----------------------------------------------------------------------------
# Deterministic synthetic parameters (shapes follow the module's __init__).
# ----------------------------------------------------------------------------
def init_params(key, in_codim, out_codim, modes1):
    scale = (1.0 / (2 * in_codim)) ** 0.5
    k1, k2, k3, k4, k5, k6 = jax.random.split(key, 6)
    # SpectralConv1d_Uno.weights1 : complex (in, out, modes1) -> real/imag parts.
    spec_wr = scale * jax.random.normal(k1, (in_codim, out_codim, modes1), jnp.float32)
    spec_wi = scale * jax.random.normal(k2, (in_codim, out_codim, modes1), jnp.float32)
    # Conv1d(in, out, 1): weight (out, in, 1) squeezed to (out, in), bias (out,).
    bound = 1.0 / np.sqrt(in_codim)
    conv_w = jax.random.uniform(k3, (out_codim, in_codim), jnp.float32, -bound, bound)
    conv_b = jax.random.uniform(k4, (out_codim,), jnp.float32, -bound, bound)
    # InstanceNorm1d(affine=True): torch default init is gamma=1 / beta=0; use a
    # small perturbation so the affine broadcast path is actually exercised.
    gamma = 1.0 + 0.1 * jax.random.normal(k5, (out_codim,), jnp.float32)
    beta = 0.1 * jax.random.normal(k6, (out_codim,), jnp.float32)
    return dict(spec_wr=spec_wr, spec_wi=spec_wi, conv_w=conv_w, conv_b=conv_b,
                gamma=gamma, beta=beta)


# ----------------------------------------------------------------------------
# Pure-JAX reference (uses jnp.fft) for a sanity check of the kernel math.
# ----------------------------------------------------------------------------
def reference_forward(x, params, dim1):
    B, Cin, Lin = x.shape
    Cout = params["conv_w"].shape[0]
    M = params["spec_wr"].shape[-1]
    w = params["spec_wr"] + 1j * params["spec_wi"]
    x_ft = jnp.fft.rfft(x, norm="forward")
    out_ft = jnp.zeros((B, Cout, dim1 // 2 + 1), dtype=jnp.complex64)
    out_ft = out_ft.at[:, :, :M].set(jnp.einsum("bix,iox->box", x_ft[:, :, :M], w))
    x1 = jnp.fft.irfft(out_ft, n=dim1, norm="forward")
    y = jnp.einsum("oi,bil->bol", params["conv_w"], x) + params["conv_b"][None, :, None]
    P = jnp.asarray(_interp_matrix_np(Lin, dim1), jnp.float32)
    x2 = jnp.einsum("bol,sl->bos", y, P)
    z = x1 + x2
    mean = jnp.mean(z, axis=-1, keepdims=True)
    var = jnp.mean((z - mean) ** 2, axis=-1, keepdims=True)
    zn = (z - mean) / jnp.sqrt(var + 1e-5)
    zn = zn * params["gamma"][None, :, None] + params["beta"][None, :, None]
    return jax.nn.gelu(zn, approximate=False)


if __name__ == "__main__":
    B, Cin, Cout = 16, 4, 8
    Lin = 16          # input grid size
    dim1 = 16         # output grid size (== Lin -> interpolation is identity)
    modes1 = dim1 // 2  # module default (= 8)

    key = jax.random.PRNGKey(0)
    kx, kp = jax.random.split(key)
    x = jax.random.normal(kx, (B, Cin, Lin), jnp.float32)
    params = init_params(kp, Cin, Cout, modes1)

    out = jax.block_until_ready(operator_block_1d(x, params, dim1))

    assert out.shape == (B, Cout, dim1)
    assert bool(jnp.all(jnp.isfinite(out)))

    ref = jax.block_until_ready(reference_forward(x, params, dim1))
    np.testing.assert_allclose(np.asarray(out), np.asarray(ref), rtol=1e-3, atol=1e-3)

    print("KERNEL_OK")
</pallas_src>

<mosaic_0001>
module attributes {stable_mosaic.version = 11 : i64} {
  func.func @_operator_block_kernel(%arg0: i32, %arg1: memref<8x64xf32, #tpu.memory_space<vmem>>, %arg2: memref<64x128xf32, #tpu.memory_space<vmem>>, %arg3: memref<1x128xf32, #tpu.memory_space<vmem>>, %arg4: memref<128x8xf32, #tpu.memory_space<vmem>>, %arg5: memref<8x128xf32, #tpu.memory_space<vmem>>, %arg6: memref<1x128xf32, #tpu.memory_space<vmem>>, %arg7: memref<1x128xf32, #tpu.memory_space<vmem>>, %arg8: memref<8x128xf32, #tpu.memory_space<vmem>>) attributes {dimension_semantics = [#tpu.dimension_semantics<parallel>], iteration_bounds = array<i64: 2>, scalar_prefetch = 0 : i64, scratch_operands = 0 : i64, tpu.core_type = #tpu.core_type<tc>, window_params = [{transform_indices = @transform_0, window_bounds = array<i64: 8, 64>}, {pipeline_mode = #tpu.pipeline_mode<synchronous>, transform_indices = @transform_1, window_bounds = array<i64: 64, 128>}, {pipeline_mode = #tpu.pipeline_mode<synchronous>, transform_indices = @transform_2, window_bounds = array<i64: 1, 128>}, {pipeline_mode = #tpu.pipeline_mode<synchronous>, transform_indices = @transform_3, window_bounds = array<i64: 128, 8>}, {pipeline_mode = #tpu.pipeline_mode<synchronous>, transform_indices = @transform_4, window_bounds = array<i64: 8, 128>}, {pipeline_mode = #tpu.pipeline_mode<synchronous>, transform_indices = @transform_5, window_bounds = array<i64: 1, 128>}, {pipeline_mode = #tpu.pipeline_mode<synchronous>, transform_indices = @transform_6, window_bounds = array<i64: 1, 128>}, {transform_indices = @transform_7, window_bounds = array<i64: 8, 128>}]} {
    %c0 = arith.constant 0 : index
    %c0_0 = arith.constant 0 : index
    %0 = vector.load %arg1[%c0, %c0_0] : memref<8x64xf32, #tpu.memory_space<vmem>>, vector<8x64xf32>
    %c0_1 = arith.constant 0 : index
    %c0_2 = arith.constant 0 : index
    %1 = vector.load %arg2[%c0_1, %c0_2] : memref<64x128xf32, #tpu.memory_space<vmem>>, vector<64x128xf32>
    %cst = arith.constant dense<0.000000e+00> : vector<8x128xf32>
    %2 = tpu.matmul %0, %1, %cst {dimension_numbers = #tpu.dot_dimension_numbers<[1], [0], [0], [1], [0, 0, 1, 1], [], []>} : vector<8x64xf32>, vector<64x128xf32>, vector<8x128xf32> -> vector<8x128xf32>
    %c0_3 = arith.constant 0 : index
    %c0_4 = arith.constant 0 : index
    %3 = vector.load %arg3[%c0_3, %c0_4] : memref<1x128xf32, #tpu.memory_space<vmem>>, vector<1x128xf32>
    %4 = vector.broadcast %3 : vector<1x128xf32> to vector<8x128xf32>
    %5 = arith.addf %2, %4 : vector<8x128xf32>
    %c0_5 = arith.constant 0 : index
    %c0_6 = arith.constant 0 : index
    %6 = vector.load %arg4[%c0_5, %c0_6] : memref<128x8xf32, #tpu.memory_space<vmem>>, vector<128x8xf32>
    %cst_7 = arith.constant dense<0.000000e+00> : vector<8x8xf32>
    %7 = tpu.matmul %5, %6, %cst_7 {dimension_numbers = #tpu.dot_dimension_numbers<[1], [0], [0], [1], [0, 0, 1, 1], [], []>} : vector<8x128xf32>, vector<128x8xf32>, vector<8x8xf32> -> vector<8x8xf32>
    %c0_8 = arith.constant 0 : index
    %c0_9 = arith.constant 0 : index
    %8 = vector.load %arg5[%c0_8, %c0_9] : memref<8x128xf32, #tpu.memory_space<vmem>>, vector<8x128xf32>
    %cst_10 = arith.constant dense<0.000000e+00> : vector<8x128xf32>
    %9 = tpu.matmul %7, %8, %cst_10 {dimension_numbers = #tpu.dot_dimension_numbers<[1], [0], [0], [1], [0, 0, 1, 1], [], []>} : vector<8x8xf32>, vector<8x128xf32>, vector<8x128xf32> -> vector<8x128xf32>
    %10 = arith.subf %5, %9 : vector<8x128xf32>
    %11 = arith.mulf %10, %10 : vector<8x128xf32>
    %c0_11 = arith.constant 0 : index
    %c0_12 = arith.constant 0 : index
    %12 = vector.load %arg4[%c0_11, %c0_12] : memref<128x8xf32, #tpu.memory_space<vmem>>, vector<128x8xf32>
    %cst_13 = arith.constant dense<0.000000e+00> : vector<8x8xf32>
    %13 = tpu.matmul %11, %12, %cst_13 {dimension_numbers = #tpu.dot_dimension_numbers<[1], [0], [0], [1], [0, 0, 1, 1], [], []>} : vector<8x128xf32>, vector<128x8xf32>, vector<8x8xf32> -> vector<8x8xf32>
    %cst_14 = arith.constant 9.99999974E-6 : f32
    %14 = vector.broadcast %cst_14 : f32 to vector<8x8xf32>
    %15 = arith.addf %13, %14 : vector<8x8xf32>
    %16 = math.rsqrt %15 : vector<8x8xf32>
    %c0_15 = arith.constant 0 : index
    %c0_16 = arith.constant 0 : index
    %17 = vector.load %arg5[%c0_15, %c0_16] : memref<8x128xf32, #tpu.memory_space<vmem>>, vector<8x128xf32>
    %cst_17 = arith.constant dense<0.000000e+00> : vector<8x128xf32>
    %18 = tpu.matmul %16, %17, %cst_17 {dimension_numbers = #tpu.dot_dimension_numbers<[1], [0], [0], [1], [0, 0, 1, 1], [], []>} : vector<8x8xf32>, vector<8x128xf32>, vector<8x128xf32> -> vector<8x128xf32>
    %19 = arith.mulf %10, %18 : vector<8x128xf32>
    %c0_18 = arith.constant 0 : index
    %c0_19 = arith.constant 0 : index
    %20 = vector.load %arg6[%c0_18, %c0_19] : memref<1x128xf32, #tpu.memory_space<vmem>>, vector<1x128xf32>
    %21 = vector.broadcast %20 : vector<1x128xf32> to vector<8x128xf32>
    %22 = arith.mulf %19, %21 : vector<8x128xf32>
    %c0_20 = arith.constant 0 : index
    %c0_21 = arith.constant 0 : index
    %23 = vector.load %arg7[%c0_20, %c0_21] : memref<1x128xf32, #tpu.memory_space<vmem>>, vector<1x128xf32>
    %24 = vector.broadcast %23 : vector<1x128xf32> to vector<8x128xf32>
    %25 = arith.addf %22, %24 : vector<8x128xf32>
    %cst_22 = arith.constant 5.000000e-01 : f32
    %26 = vector.broadcast %cst_22 : f32 to vector<8x128xf32>
    %27 = arith.mulf %26, %25 : vector<8x128xf32>
    %cst_23 = arith.constant 0.707106769 : f32
    %28 = vector.broadcast %cst_23 : f32 to vector<8x128xf32>
    %29 = arith.mulf %25, %28 : vector<8x128xf32>
    %30 = math.erf %29 : vector<8x128xf32>
    %cst_24 = arith.constant 1.000000e+00 : f32
    %31 = vector.broadcast %cst_24 : f32 to vector<8x128xf32>
    %32 = arith.addf %31, %30 : vector<8x128xf32>
    %33 = arith.mulf %27, %32 : vector<8x128xf32>
    %c0_25 = arith.constant 0 : index
    %c0_26 = arith.constant 0 : index
    %34 = vector.load %arg8[%c0_25, %c0_26] : memref<8x128xf32, #tpu.memory_space<vmem>>, vector<8x128xf32>
    tpu.vector_store %arg8[%c0_25, %c0_26], %33 {strides = array<i32>} : memref<8x128xf32, #tpu.memory_space<vmem>>, vector<8x128xf32>,
    return
  }
  func.func @transform_0(%arg0: i32) -> (i32, i32) {
    %c0_i32 = arith.constant 0 : i32
    %c0_i32_0 = arith.constant 0 : i32
    return %arg0, %c0_i32 : i32, i32
  }
  func.func @transform_1(%arg0: i32) -> (i32, i32) {
    %c0_i32 = arith.constant 0 : i32
    %c0_i32_0 = arith.constant 0 : i32
    %c0_i32_1 = arith.constant 0 : i32
    return %c0_i32, %c0_i32_0 : i32, i32
  }
  func.func @transform_2(%arg0: i32) -> (i32, i32) {
    %c0_i32 = arith.constant 0 : i32
    %c0_i32_0 = arith.constant 0 : i32
    %c0_i32_1 = arith.constant 0 : i32
    return %c0_i32, %c0_i32_0 : i32, i32
  }
  func.func @transform_3(%arg0: i32) -> (i32, i32) {
    %c0_i32 = arith.constant 0 : i32
    %c0_i32_0 = arith.constant 0 : i32
    %c0_i32_1 = arith.constant 0 : i32
    return %c0_i32, %c0_i32_0 : i32, i32
  }
  func.func @transform_4(%arg0: i32) -> (i32, i32) {
    %c0_i32 = arith.constant 0 : i32
    %c0_i32_0 = arith.constant 0 : i32
    %c0_i32_1 = arith.constant 0 : i32
    return %c0_i32, %c0_i32_0 : i32, i32
  }
  func.func @transform_5(%arg0: i32) -> (i32, i32) {
    %c0_i32 = arith.constant 0 : i32
    %c0_i32_0 = arith.constant 0 : i32
    %c0_i32_1 = arith.constant 0 : i32
    return %c0_i32, %c0_i32_0 : i32, i32
  }
  func.func @transform_6(%arg0: i32) -> (i32, i32) {
    %c0_i32 = arith.constant 0 : i32
    %c0_i32_0 = arith.constant 0 : i32
    %c0_i32_1 = arith.constant 0 : i32
    return %c0_i32, %c0_i32_0 : i32, i32
  }
  func.func @transform_7(%arg0: i32) -> (i32, i32) {
    %c0_i32 = arith.constant 0 : i32
    %c0_i32_0 = arith.constant 0 : i32
    return %arg0, %c0_i32 : i32, i32
  }
}

</mosaic_0001>

<bundles_post_ra>
// kernel: tpu_custom_call.1
= control target key start
LH: loop header
LB: loop body
LE: loop exit
PB: predicated region body
PF: predicated region fallthrough
CT: control target
= control target key end

     0   :  { %12 = vsyncpa [#allocation3], 0  ;;  %s893_s0 = inlined_call_operand.vmem [shape: f32[16,64], index: 0, kind: input, shape index: {}]   ;;  %s894_s1 = inlined_call_operand.vmem [shape: f32[64,128], index: 1, kind: input, shape index: {}]   ;;  %s895_s2 = inlined_call_operand.vmem [shape: f32[1,128], index: 2, kind: input, shape index: {}]   ;;  %s896_s3 = inlined_call_operand.vmem [shape: f32[128,8], index: 3, kind: input, shape index: {}]   ;;  %s897_s4 = inlined_call_operand.vmem [shape: f32[8,128], index: 4, kind: input, shape index: {}]   ;;  %s898_s5 = inlined_call_operand.vmem [shape: f32[1,128], index: 5, kind: input, shape index: {}]   ;;  %s899_s6 = inlined_call_operand.vmem [shape: f32[1,128], index: 6, kind: input, shape index: {}]   ;;  %s900_s7 = inlined_call_operand.hbm [shape: f32[16,128], index: 7, kind: output, shape index: {}]  }
   0x1   :  { %14 = vsyncpa [#allocation3 + $0x1], 0  ;;  %s722_s24 = smov 0   ;;  %s724_s25 = smov 0  }
   0x2   :  { %s726_s26 = smov 0   ;;  %s728_s27 = smov 0  }
   0x3 LB: > { %s743_s28 = sadd.s32 4294967295, %s680_s27   ;;  %s558_s29 = sadd.s32 4294967294, %s680_s27   ;;  %s680_s27 = sphi %s728_s27, %s906_s27   ;;  %s676_s26 = sphi %s726_s26, %s905_s26   ;;  %s672_s25 = sphi %s724_s25, %s904_s25   ;;  %s668_s24 = sphi %s722_s24, %s903_s24  }
   0x4   : > { %s747_s30 = sadd.s32 1, %s680_s27   ;;  %s179_s8 = sadd.s32 1, %s676_s26 }
   0x5   : > { %s176_s9 = ssub.s32 %s680_s27, %s747_s30  ;;  %p189_p0 = scmp.ne.s32.totalorder %s676_s26, %s672_s25 }
   0x6   : > { %p177_p1 = scmp.eq.s32.totalorder %s176_s9, 0  ;;  %p190_p2 = scmp.eq.s32.totalorder %s743_s28, 1 }
   0x7   : > { %p195_p3 = scmp.ne.s32.totalorder %s672_s25, %s668_s24  ;;  %p196_p4 = scmp.eq.s32.totalorder %s558_s29, 1 }
   0x8   : > { %s758_s10 = scalar_select %p177_p1, %s676_s26, %s179_s8  }
   0x9   : > { %p760_p5 = por %p190_p2, %p189_p0  ;;  %p764_p6 = por %p196_p4, %p195_p3 }
   0xa   : > { %p561_p7 = scmp.ge.s32.totalorder %s680_s27, 1  ;;  %p239_p8 = scmp.lt.s32.totalorder %s680_s27, 3 }
   0xc   : > { %p240_p9 = pnand %p561_p7, %p239_p8 }
   0xd   : > { %p270_p10 = scmp.lt.s32.totalorder (!%p240_p9), %s743_s28, 1  ;;  %s267_s18 = sand.u32 (!%p240_p9), 1, %s672_s25  }
   0xe   : > { %243 = sbr.rel (%p240_p9) target bundleno = 769 (0x301), region = 48  ;;  %s562_s19 = sshll.u32 (!%p240_p9), %s267_s18, 3 }
   0xf   : > { %s269_s8 = scalar_lea.vmem (!%p240_p9), [#allocation2], %s562_s19  ;;  %s638_s17 = scalar_lea.hbm (!%p240_p9), %s900_s7, 16 }
  0x10   : > { %s496_s9 = sshll.u32 (!%p240_p9), %s269_s8, 4  ;;  %s497_s9 = int_to_ptr.vmem [resolvable:$true] %s496_s9 }
  0x13   : > { %v282_v0 = vld [vmem:[%s894_s1 + $0x38] sm:$0xff]  ;;  %v281_v1 = vld [vmem:[%s894_s1 + $0x30] sm:$0xff]  ;;  %v280_v2 = vld [vmem:[%s894_s1 + $0x28] sm:$0xff]  ;;  %s271_s21 = scalar_select %p270_p10, %s743_s28, 1  ;;  %vm287_vm0 = vcmask 523264   ;;  %vm348_vm1 = vcmask 64512  }
  0x14   : > { %299 = vmatpush.msra.mxu0 %v282_v0  ;;  %v326_v3 = vld [vmem:[%s896_s3 + $0x78] sm:$0xff]  ;;  %v325_v4 = vld [vmem:[%s896_s3 + $0x70] sm:$0xff]  ;;  %v279_v5 = vld [vmem:[%s894_s1 + $0x20] sm:$0xff] }
  0x15   : > { %327 = vmatpush.msra.mxu1 %v326_v3  ;;  %v324_v6 = vld [vmem:[%s896_s3 + $0x68] sm:$0xff]  ;;  %374 = vmatpush.msra.mxu3 %v326_v3  ;;  %v278_v7 = vld [vmem:[%s894_s1 + $0x18] sm:$0xff]  ;;  %v323_v8 = vld [vmem:[%s896_s3 + $0x60] sm:$0xff]  ;;  %s563_s20 = sshll.u32 %s271_s21, 3 }
  0x16   : > { %300 = vmatpush.msra.mxu0 %v281_v1  ;;  %v277_v9 = vld [vmem:[%s894_s1 + $0x10] sm:$0xff]  ;;  %v322_v10 = vld [vmem:[%s896_s3 + $0x58] sm:$0xff]  ;;  %v276_v11 = vld [vmem:[%s894_s1 + $0x8] sm:$0xff]  ;;  %s273_s14 = scalar_lea.vmem %s893_s0, %s563_s20  ;;  %s569_s20 = sshll.u32 %s743_s28, 3 }
  0x17   : > { %328 = vmatpush.msra.mxu1 %v325_v4  ;;  %375 = vmatpush.msra.mxu3 %v325_v4  ;;  %v321_v12 = vld [vmem:[%s896_s3 + $0x50] sm:$0xff]  ;;  %v275_v13 = vld [vmem:[%s894_s1] sm:$0xff]  ;;  %v320_v14 = vld [vmem:[%s896_s3 + $0x48] sm:$0xff]  ;;  %s494_s29 = scalar_lea.hbm %s900_s7, %s569_s20  ;;  %s484_s28 = scalar_lea.sflag [#allocation3], %s267_s18 }
  0x18   : > { %301 = vmatpush.msra.mxu0 %v280_v2  ;;  %v274_v15 = vld [vmem:[%s273_s14] sm:$0xff]  ;;  %v318_v17 = vld [vmem:[%s896_s3 + $0x38] sm:$0xff]  ;;  %v317_v18 = vld [vmem:[%s896_s3 + $0x30] sm:$0xff]  ;;  %s498_s13 = sshll.u32 %s494_s29, 4  ;;  %s499_s13 = int_to_ptr.hbm [resolvable:$true] %s498_s13 }
  0x19   : > { %329 = vmatpush.msra.mxu1 %v324_v6  ;;  %376 = vmatpush.msra.mxu3 %v324_v6  ;;  %v319_v16 = vld [vmem:[%s896_s3 + $0x40] sm:$0xff]  ;;  %v316_v19 = vld [vmem:[%s896_s3 + $0x28] sm:$0xff]  ;;  %v314_v21 = vld [vmem:[%s896_s3 + $0x18] sm:$0xff]  ;;  %s632_s14 = sshra.s32 %s499_s13, 4  ;;  %s633_s14 = int_to_ptr.hbm [resolvable:$true] %s632_s14 }
  0x1a   : > { %302 = vmatpush.msra.mxu0 %v279_v5  ;;  %v315_v20 = vld [vmem:[%s896_s3 + $0x20] sm:$0xff]  ;;  %v313_v22 = vld [vmem:[%s896_s3 + $0x10] sm:$0xff]  ;;  %v312_v23 = vld [vmem:[%s896_s3 + $0x8] sm:$0xff]  ;;  %s634_s15 = scalar_lea.hbm %s633_s14, 8  ;;  %p639_p0 = scmp.lt.s32.totalorder %s633_s14, %s900_s7 }
  0x1b   : > { %330 = vmatpush.msra.mxu1 %v323_v8  ;;  %377 = vmatpush.msra.mxu3 %v323_v8  ;;  %v311_v24 = vld [vmem:[%s896_s3] sm:$0xff]  ;;  %p635_p11 = scmp.ne.s32.totalorder %s633_s14, %s634_s15  ;;  %p640_p1 = scmp.lt.s32.totalorder %s638_s17, %s634_s15 }
  0x1c   : > { %303 = vmatpush.msra.mxu0 %v278_v7  ;;  %v611_v25 = vld [vmem:[%s895_s2] ss:$0 sm:$0xff] }
  0x1d   : > { %331 = vmatpush.msra.mxu1 %v322_v10  ;;  %378 = vmatpush.msra.mxu3 %v322_v10  ;;  %v347_v28 = vld [vmem:[%s897_s4] sm:$0xff]  ;;  %p636_p12 = pnand %p635_p11, %p760_p5  ;;  %p641_p2 = por %p640_p1, %p639_p0 }
  0x1e   : > { %304 = vmatpush.msra.mxu0 %v277_v9  ;;  %367 = vmatpush.msra.mxu2 %v347_v28  ;;  %v612_v42 = vld [vmem:[%s898_s5] ss:$0 sm:$0xff] }
  0x1f   : > { %332 = vmatpush.msra.mxu1 %v321_v12  ;;  %379 = vmatpush.msra.mxu3 %v321_v12  ;;  %v613_v45 = vld [vmem:[%s899_s6] ss:$0 sm:$0xff]  ;;  %p637_p13 = pneg %p636_p12 }
  0x20   : > { %305 = vmatpush.msra.mxu0 %v276_v11  ;;  %422 = vmatpush.msrb.mxu2 %v347_v28 }
  0x21   : > { %333 = vmatpush.msra.mxu1 %v320_v14  ;;  %380 = vmatpush.msra.mxu3 %v320_v14  ;;  %p642_p3 = pnand %p641_p2, %p637_p13 }
  0x22   : > { %306 = vmatpush.msra.mxu0 %v275_v13 }
  0x23   : > { %564 = vmatmul.msk.f32.vlgmr.msra.gmra.mxu0 %vm287_vm0, %v274_v15  ;;  %334 = vmatpush.msra.mxu1 %v319_v16 }
  0x24   : > { %381 = vmatpush.msra.mxu3 %v319_v16 }
  0x25   : > { %335 = vmatpush.msra.mxu1 %v318_v17 }
  0x26   : > { %382 = vmatpush.msra.mxu3 %v318_v17 }
  0x27   : > { %336 = vmatpush.msra.mxu1 %v317_v18 }
  0x28   : > { %383 = vmatpush.msra.mxu3 %v317_v18 }
  0x29   : > { %337 = vmatpush.msra.mxu1 %v316_v19 }
  0x2a   : > { %384 = vmatpush.msra.mxu3 %v316_v19 }
  0x2b   : > { %338 = vmatpush.msra.mxu1 %v315_v20 }
  0x2c   : > { %385 = vmatpush.msra.mxu3 %v315_v20 }
  0x2d   : > { %339 = vmatpush.msra.mxu1 %v314_v21 }
  0x2e   : > { %386 = vmatpush.msra.mxu3 %v314_v21 }
  0x2f   : > { %340 = vmatpush.msra.mxu1 %v313_v22 }
  0x30   : > { %387 = vmatpush.msra.mxu3 %v313_v22 }
  0x31   : > { %341 = vmatpush.msra.mxu1 %v312_v23 }
  0x32   : > { %388 = vmatpush.msra.mxu3 %v312_v23 }
  0x33   : > { %342 = vmatpush.msra.mxu1 %v311_v24 }
  0x34   : > { %389 = vmatpush.msra.mxu3 %v311_v24 }
  0xa0   : > { %v308_v26 = vpop.f32.mrf.mxu0 }
  0xa1   : > { %v309_v27 = vadd.f32 %v611_v25, %v308_v26 }
  0xa3   : > { %343 = vmatmul.f32.vlgmr.msra.gmra.mxu1 %v309_v27 }
 0x120   : > { %v344_v29 = vpop.f32.mrf.mxu1 }
 0x121   : > { %565 = vmatmul.msk.f32.vlgmr.msra.gmra.mxu2 %vm348_vm1, %v344_v29 }
 0x1a4   : > { %v369_v30 = vpop.f32.mrf.mxu2 }
 0x1a5   : > { %v372_v31 = vsub.f32 %v309_v27, %v369_v30 }
 0x1a7   : > { %v373_v32 = vmul.f32 %v372_v31, %v372_v31 }
 0x1a9   : > { %390 = vmatmul.f32.vlgmr.msra.gmra.mxu3 %v373_v32 }
 0x22c   : > { %v391_v33 = vpop.f32.mrf.mxu3 }
 0x22d   : > { %v392_v34 = vadd.f32 1e-05, %v391_v33 }
 0x22f   : > { %614 = vrsqrt.f32 %v392_v34  ;;  %vm400_vm3 = vweird.f32 %v392_v34 }
 0x235   : > { %v615_v35 = vpop.eup %614 }
 0x236   : > { %v395_v36 = vmul.f32 %v615_v35, %v392_v34  ;;  %vm401_vm2 = vweird.f32 %v615_v35 }
 0x237   : > { %vm402_vm4 = vmor %vm400_vm3, %vm401_vm2 }
 0x238   : > { %v396_v37 = vmul.f32 %v615_v35, %v395_v36 }
 0x23a   : > { %v397_v38 = vmul.f32 0.5, %v396_v37 }
 0x23c   : > { %v398_v39 = vsub.f32 1.5, %v397_v38 }
 0x23e   : > { %v399_v40 = vmul.f32 %v615_v35, %v398_v39 }
 0x240   : > { %v403_v41 = vsel %vm402_vm4, %v615_v35, %v399_v40 }
 0x241   : > { %566 = vmatmul.msk.f32.vlgmr.msrb.gmra.mxu2 %vm348_vm1, %v403_v41 }
 0x2c4   : > { %v424_v43 = vpop.f32.mrf.mxu2 }
 0x2c5   : > { %v427_v44 = vmul.f32 %v424_v43, %v372_v31 }
 0x2c7   : > { %v432_v46 = vmul.f32 %v612_v42, %v427_v44 }
 0x2c9   : > { %v437_v47 = vadd.f32 %v613_v45, %v432_v46 }
 0x2cb   : > { %v439_v48 = vmul.f32 0.70710677, %v437_v47  ;;  %v438_v20 = vmul.f32 0.5, %v437_v47 }
 0x2cd   : > { %v440_v49 = vmul.f32 %v439_v48, %v439_v48 }
 0x2cf   : > { %v441_v50 = vmin.f32 %v440_v49, 16.0 }
 0x2d1   : > { %v442_v51 = vmul.f32 2.1237322e-06, %v441_v50  ;;  %v453_v52 = vmul.f32 3.8918573e-05, %v441_v50 }
 0x2d3   : > { %v443_v53 = vadd.f32 0.00028619796, %v442_v51  ;;  %v454_v54 = vadd.f32 0.001143296, %v453_v52 }
 0x2d5   : > { %v444_v55 = vmul.f32 %v443_v53, %v441_v50  ;;  %v455_v56 = vmul.f32 %v454_v54, %v441_v50 }
 0x2d7   : > { %v456_v57 = vadd.f32 0.014752088, %v455_v56  ;;  %v445_v58 = vadd.f32 0.0036580483, %v444_v55 }
 0x2d9   : > { %v457_v59 = vmul.f32 %v456_v57, %v441_v50  ;;  %v446_v61 = vmul.f32 %v445_v58, %v441_v50 }
 0x2db   : > { %v458_v60 = vadd.f32 0.112945676, %v457_v59  ;;  %v447_v0 = vadd.f32 0.05243302, %v446_v61 }
 0x2dd   : > { %v459_v62 = vmul.f32 %v458_v60, %v441_v50  ;;  %v448_v3 = vmul.f32 %v447_v0, %v441_v50 }
 0x2df   : > { %v460_v63 = vadd.f32 0.4994258, %v459_v62  ;;  %v449_v4 = vadd.f32 0.18741608, %v448_v3 }
 0x2e1   : > { %v461_v1 = vmul.f32 %v460_v63, %v441_v50  ;;  %v450_v6 = vmul.f32 %v449_v4, %v441_v50 }
 0x2e3   : > { %v462_v2 = vadd.f32 1.0, %v461_v1  ;;  %v451_v10 = vadd.f32 1.1283791, %v450_v6 }
 0x2e5   : > { %616 = vrcp.f32 %v462_v2  ;;  %v474_v9 = vand.u32 2147483648, %v462_v2  ;;  %v472_v12 = vand.u32 2147483647, %v462_v2  ;;  %vm468_vm6 = vweird.f32 %v462_v2 }
 0x2e6   : > { %v452_v15 = vmul.f32 %v451_v10, %v439_v48 }
 0x2e7   : > { %v475_v14 = vor.u32 1.1754944e-38, %v474_v9  ;;  %vm473_vm8 = vcmp.eq.f32.partialorder %v472_v12, 8.507059e+37 }
 0x2eb   : > { %v617_v5 = vpop.eup %616 }
 0x2ec   : > { %v464_v7 = vmul.f32 %v617_v5, %v462_v2  ;;  %vm469_vm5 = vweird.f32 %v617_v5 }
 0x2ed   : > { %vm470_vm7 = vmor %vm468_vm6, %vm469_vm5 }
 0x2ee   : > { %v465_v8 = vsub.f32 1.0, %v464_v7 }
 0x2f0   : > { %v466_v11 = vmul.f32 %v617_v5, %v465_v8 }
 0x2f2   : > { %v467_v13 = vadd.f32 %v617_v5, %v466_v11 }
 0x2f4   : > { %v471_v16 = vsel %vm470_vm7, %v617_v5, %v467_v13 }
 0x2f5   : > { %v476_v17 = vsel %vm473_vm8, %v475_v14, %v471_v16 }
 0x2f6   : > { %v477_v18 = vmul.f32 %v476_v17, %v452_v15 }
 0x2f8   : > { %v567_v19 = vclamps-f32 %v477_v18, 1.0 }
 0x2fa   : > { %v480_v21 = vadd.f32 1.0, %v567_v19 }
 0x2fc   : > { %v481_v22 = vmul.f32 %v480_v21, %v438_v20 }
 0x2fe   : > { %482 = vst [vmem:[%s269_s8] sm:$0xff] %v481_v22 }
 0x2ff   : > { %645 = shalt.err (!%p642_p3)
}
 0x300   : > { %572 = dma.vmem_to_hbm [thread:$0]  (%p760_p5), %s497_s9, 128, %s499_s13, %s484_s28  }
 0x301 PF: > { %p578_p4 = scmp.ge.s32.totalorder %s680_s27, 2  ;;  %s510_s18 = sand.u32 1, %s668_s24  }
 0x302   : > { %s511_s22 = scalar_lea.sflag [#allocation3], %s510_s18 }
 0x303   : > { %p575_p7 = pnand %p578_p4, %p764_p6 }
 0x305   : > { %p576_p8 = pneg %p575_p7 }
 0x307   : > { %663 = dma.done.wait (%p576_p8), %s511_s22, 128  }
 0x308   : > { %665 = vsyncadd (%p576_p8), %s511_s22, 4294967168  ;;  %p17_p9 = scmp.ge.s32.totalorder %s747_s30, 4   ;;  %s903_s24 = smov %s672_s25 }
 0x309   : > { %s904_s25 = smov %s676_s26  ;;  %s905_s26 = smov %s758_s10 }
 0x30a   : > { %s906_s27 = smov %s747_s30  ;;  %19 = sbr.rel (!%p17_p9) target bundleno = 3 (0x3), region = 83 }
 0x30f   :  { %517 = vsyncpa [#allocation3], 1 }
 0x310   :  { %519 = vsyncpa [#allocation3 + $0x1], 1 }

</bundles_post_ra>
